<compile_context>
chip_gen: v7x
topology: tpu7x:2x2x1
jax: 0.10.0
libtpu: 0.0.40
codegen_flags: <defaults>
</compile_context>

<pallas_src>
import math

import jax
import jax.numpy as jnp
import numpy as np
from jax import lax
from jax.experimental import pallas as pl
from jax.experimental.pallas import tpu as pltpu


def _round_up(x, m):
    return ((x + m - 1) // m) * m


def _freq_phase(embedding_dim):
    """(2, D) table: row 0 = per-column frequency, row 1 = phase.
    Columns [0, half) are the sin half (phase 0), [half, 2*half) the cos half
    (phase pi/2), and the odd-D trailing column has freq = phase = 0 -> sin(0)=0.
    """
    D = int(embedding_dim)
    half = D // 2
    scale = math.log(10000.0) / max(half - 1, 1)   # guard D in {2, 3} (fairseq NaN)
    f = np.exp(np.arange(half, dtype=np.float64) * -scale)
    fp = np.zeros((2, D), np.float32)
    fp[0, :half] = f
    fp[0, half:2 * half] = f
    fp[1, half:2 * half] = np.pi / 2.0             # cos(x) = sin(x + pi/2)
    return jnp.asarray(fp)


def _choose_seq_tile(S, D, out_bytes, block_seq):
    """Pick the seq tile: double-buffered output + f32 table scratch + token
    buffers must fit a ~12 MiB budget (safe under v5e's 16 MiB default scoped
    VMEM; tiny vs v6e 128 MiB / v7x 64 MiB)."""
    budget = 12 * 1024 * 1024
    per_row = D * (2 * out_bytes + 4) + 2 * 4
    cap = max(budget // per_row, 16)
    ts_full = _round_up(S, 16)                     # 16-row alignment (bf16 packing)
    ts = min(int(block_seq), cap)
    if ts_full <= ts:
        return ts_full                             # single seq tile == full padded dim
    # Multi-tile: multiple of 128 keeps token/output blocks lane-aligned.
    return max((ts // 128) * 128, 128)


def _make_shared_table_kernel(padding_idx, base, ts):
    """left_pad=False: batch-invariant positions -> compute the sinusoid table
    once per seq tile (at batch index 0) into VMEM scratch and reuse it."""

    def kernel(tok_ref, fp_ref, out_ref, tab_ref):
        # tok_ref : (1, 1, TS) int32     lane-dense token row
        # fp_ref  : (2, D)     float32   row 0 = freq, row 1 = phase (resident)
        # out_ref : (1, TS, D) out_dtype
        # tab_ref : (TS, D)    float32   VMEM scratch: sin table for this seq tile
        s_blk = pl.program_id(0)
        b = pl.program_id(1)

        @pl.when(b == 0)
        def _():
            pos = (base + s_blk * ts
                   + lax.broadcasted_iota(jnp.int32, (ts, 1), 0)).astype(jnp.float32)
            tab_ref[...] = jnp.sin(pos * fp_ref[0:1, :] + fp_ref[1:2, :])

        # (1, TS) lane-layout mask -> (TS, 1) column: one small XLU transpose.
        maskf = jnp.transpose((tok_ref[0] != padding_idx).astype(jnp.float32))
        out_ref[...] = (tab_ref[...] * maskf)[None, :, :].astype(out_ref.dtype)

    return kernel


def _make_per_batch_kernel(padding_idx, ts):
    """left_pad=True: per-batch position base (encodes the left-pad shift) via
    scalar prefetch; sinusoids recomputed per (batch, seq tile)."""
    # TODO(synk): on v7x the pos x freq outer product could go to the idle MXU
    # (jnp.dot of (TS,1)x(1,D)); kept on the VPU for lowering robustness.

    def kernel(base_ref, tok_ref, fp_ref, out_ref):
        s_blk = pl.program_id(0)
        b = pl.program_id(1)
        pos = (base_ref[b] + s_blk * ts
               + lax.broadcasted_iota(jnp.int32, (ts, 1), 0)).astype(jnp.float32)
        emb = jnp.sin(pos * fp_ref[0:1, :] + fp_ref[1:2, :])          # (TS, D)
        maskf = jnp.transpose((tok_ref[0] != padding_idx).astype(jnp.float32))
        out_ref[...] = (emb * maskf)[None, :, :].astype(out_ref.dtype)

    return kernel


def sinusoidal_positional_embedding(tokens, embedding_dim, padding_idx=0,
                                    left_pad=False, out_dtype=jnp.float32,
                                    block_seq=1024):
    """tokens: [B, S] int -> [B, S, embedding_dim].

    out_dtype=jnp.float32 matches the PyTorch module exactly; jnp.bfloat16 is
    recommended for production (math stays f32, only the store is cast, HBM
    write traffic halves).
    """
    tokens = jnp.asarray(tokens, jnp.int32)
    B, S = tokens.shape
    D = int(embedding_dim)
    out_bytes = jnp.dtype(out_dtype).itemsize
    pad_i = int(padding_idx)

    # Per-batch base (only needed for left_pad): computed on the ORIGINAL S columns.
    if left_pad:
        nonpad = jnp.sum((tokens != pad_i).astype(jnp.int32), axis=1)
        base = (pad_i + 1 - S + nonpad).astype(jnp.int32)

    ts = _choose_seq_tile(S, D, out_bytes, block_seq)
    s_pad = _round_up(S, ts)
    if s_pad != S:
        # Tail padded with padding tokens -> zero rows, sliced off below.
        tokens = jnp.pad(tokens, ((0, 0), (0, s_pad - S)), constant_values=pad_i)
    tok3 = tokens.reshape(B, 1, s_pad)             # lane-dense last dim for the DMA

    fp = _freq_phase(D)
    n_s = s_pad // ts
    grid = (n_s, B)                                # seq tiles outer, batch inner

    cost = pl.CostEstimate(
        flops=3 * B * s_pad * D,
        transcendentals=(B * s_pad if left_pad else s_pad) * D,
        bytes_accessed=B * s_pad * (4 + D * out_bytes) + 2 * D * 4)

    if not left_pad:
        kernel = _make_shared_table_kernel(pad_i, pad_i + 1, ts)
        out = pl.pallas_call(
            kernel,
            out_shape=jax.ShapeDtypeStruct((B, s_pad, D), out_dtype),
            grid_spec=pltpu.PrefetchScalarGridSpec(
                num_scalar_prefetch=0,
                grid=grid,
                in_specs=[
                    pl.BlockSpec((1, 1, ts), lambda s, b: (b, 0, s)),
                    pl.BlockSpec((2, D), lambda s, b: (0, 0)),
                ],
                out_specs=pl.BlockSpec((1, ts, D), lambda s, b: (b, s, 0)),
                scratch_shapes=[pltpu.VMEM((ts, D), jnp.float32)]),
            compiler_params=pltpu.CompilerParams(
                # seq axis "parallel" -> megacore sharding on v7x; batch axis must
                # stay "arbitrary": the table written at b == 0 is reused by every
                # later batch step of the same seq tile.
                dimension_semantics=("parallel", "arbitrary")),
            cost_estimate=cost,
        )(tok3, fp)
    else:
        kernel = _make_per_batch_kernel(pad_i, ts)
        out = pl.pallas_call(
            kernel,
            out_shape=jax.ShapeDtypeStruct((B, s_pad, D), out_dtype),
            grid_spec=pltpu.PrefetchScalarGridSpec(
                num_scalar_prefetch=1,
                grid=grid,
                in_specs=[
                    pl.BlockSpec((1, 1, ts), lambda s, b, base_ref: (b, 0, s)),
                    pl.BlockSpec((2, D), lambda s, b, base_ref: (0, 0)),
                ],
                out_specs=pl.BlockSpec((1, ts, D), lambda s, b, base_ref: (b, s, 0)),
            ),
            compiler_params=pltpu.CompilerParams(
                dimension_semantics=("parallel", "parallel")),
            cost_estimate=cost,
        )(base, tok3, fp)

    if s_pad != S:
        out = out[:, :S, :]
    return out


def _reference_numpy(tokens, embedding_dim, padding_idx=0, left_pad=False):
    """Pure-numpy (float64) replica of the PyTorch module for verification."""
    tokens = np.asarray(tokens)
    B, S = tokens.shape
    half = embedding_dim // 2
    scale = math.log(10000.0) / max(half - 1, 1)
    freqs = np.exp(np.arange(half, dtype=np.float64) * -scale)
    mask = tokens != padding_idx
    pos = np.broadcast_to(np.arange(S) + padding_idx + 1, (B, S)).copy()
    if left_pad:
        pos = pos - S + mask.astype(np.int64).sum(axis=1, keepdims=True)
    pos = np.where(mask, pos, padding_idx)
    arg = pos[..., None].astype(np.float64) * freqs
    emb = np.concatenate([np.sin(arg), np.cos(arg)], axis=-1)
    if embedding_dim % 2 == 1:
        emb = np.concatenate([emb, np.zeros((B, S, 1))], axis=-1)
    emb = np.where(mask[..., None], emb, 0.0)
    return emb.astype(np.float32)


if __name__ == "__main__":
    key = jax.random.PRNGKey(0)
    padding_idx = 0

    B, S, D = 2, 16, 128
    tokens = jax.random.randint(key, (B, S), minval=0, maxval=10, dtype=jnp.int32)
    tokens_np = np.asarray(tokens)

    # 1) right-padded (left_pad=False): shared-table (batch-reuse) path.
    out = jax.block_until_ready(
        sinusoidal_positional_embedding(tokens, D, padding_idx=padding_idx))
    np.testing.assert_allclose(np.asarray(out),
                               _reference_numpy(tokens_np, D, padding_idx),
                               rtol=2e-5, atol=2e-5)

    # 2) left_pad=True: per-batch base via scalar prefetch.
    out_lp = jax.block_until_ready(
        sinusoidal_positional_embedding(tokens, D, padding_idx=padding_idx,
                                        left_pad=True))
    np.testing.assert_allclose(np.asarray(out_lp),
                               _reference_numpy(tokens_np, D, padding_idx, left_pad=True),
                               rtol=2e-5, atol=2e-5)

    # 3) multi seq-tile grid (table recomputed per seq tile, reused across batch).
    tokens2 = jax.random.randint(jax.random.PRNGKey(1), (2, 256), minval=0,
                                 maxval=10, dtype=jnp.int32)
    out2 = jax.block_until_ready(
        sinusoidal_positional_embedding(tokens2, D, padding_idx=padding_idx,
                                        block_seq=128))
    np.testing.assert_allclose(np.asarray(out2),
                               _reference_numpy(np.asarray(tokens2), D, padding_idx),
                               rtol=2e-5, atol=2e-5)

    # 4) odd embedding dim (implicit trailing zero column).
    out_odd = jax.block_until_ready(
        sinusoidal_positional_embedding(tokens, 33, padding_idx=padding_idx))
    np.testing.assert_allclose(np.asarray(out_odd),
                               _reference_numpy(tokens_np, 33, padding_idx),
                               rtol=2e-5, atol=2e-5)

    # 5) bf16 store (recommended on mem-bound v5e/v6e): f32 math, cast at store.
    out_bf = jax.block_until_ready(
        sinusoidal_positional_embedding(tokens, D, padding_idx=padding_idx,
                                        out_dtype=jnp.bfloat16))
    np.testing.assert_allclose(np.asarray(out_bf).astype(np.float32),
                               _reference_numpy(tokens_np, D, padding_idx),
                               rtol=0, atol=1e-2)

    print("KERNEL_OK")
</pallas_src>

<mosaic_0001>
module attributes {stable_mosaic.version = 11 : i64} {
  func.func @kernel(%arg0: i32, %arg1: i32, %arg2: memref<1x1x16xi32, #tpu.memory_space<vmem>>, %arg3: memref<2x128xf32, #tpu.memory_space<vmem>>, %arg4: memref<1x16x128xf32, #tpu.memory_space<vmem>>, %arg5: memref<16x128xf32, #tpu.memory_space<vmem>>) attributes {dimension_semantics = [#tpu.dimension_semantics<parallel>, #tpu.dimension_semantics<arbitrary>], iteration_bounds = array<i64: 1, 2>, scalar_prefetch = 0 : i64, scratch_operands = 1 : i64, tpu.core_type = #tpu.core_type<tc>, window_params = [{transform_indices = @transform_0, window_bounds = array<i64: 1, 1, 16>}, {pipeline_mode = #tpu.pipeline_mode<synchronous>, transform_indices = @transform_1, window_bounds = array<i64: 2, 128>}, {transform_indices = @transform_2, window_bounds = array<i64: 1, 16, 128>}]} {
    %c0_i32 = arith.constant 0 : i32
    %0 = arith.cmpi eq, %arg1, %c0_i32 : i32
    %1 = arith.extui %0 : i1 to i32
    %c0_i32_0 = arith.constant 0 : i32
    %2 = arith.cmpi ne, %1, %c0_i32_0 : i32
    scf.if %2 {
      %c16_i32 = arith.constant 16 : i32
      %15 = arith.muli %arg0, %c16_i32 : i32
      %c1_i32 = arith.constant 1 : i32
      %16 = arith.addi %c1_i32, %15 : i32
      %17 = tpu.iota {dimensions = array<i32: 0>} : vector<16x1xi32>
      %18 = vector.broadcast %16 : i32 to vector<16x1xi32>
      %19 = arith.addi %18, %17 : vector<16x1xi32>
      %20 = arith.sitofp %19 : vector<16x1xi32> to vector<16x1xf32>
      %c0_9 = arith.constant 0 : index
      %c0_10 = arith.constant 0 : index
      %21 = vector.load %arg3[%c0_9, %c0_10] : memref<2x128xf32, #tpu.memory_space<vmem>>, vector<1x128xf32>
      %22 = vector.broadcast %20 : vector<16x1xf32> to vector<16x128xf32>
      %23 = vector.broadcast %21 : vector<1x128xf32> to vector<16x128xf32>
      %24 = arith.mulf %22, %23 : vector<16x128xf32>
      %c1 = arith.constant 1 : index
      %c0_11 = arith.constant 0 : index
      %25 = vector.load %arg3[%c1, %c0_11] : memref<2x128xf32, #tpu.memory_space<vmem>>, vector<1x128xf32>
      %26 = vector.broadcast %25 : vector<1x128xf32> to vector<16x128xf32>
      %27 = arith.addf %24, %26 : vector<16x128xf32>
      %28 = math.sin %27 : vector<16x128xf32>
      %c0_12 = arith.constant 0 : index
      %c0_13 = arith.constant 0 : index
      %29 = vector.load %arg5[%c0_12, %c0_13] : memref<16x128xf32, #tpu.memory_space<vmem>>, vector<16x128xf32>
      tpu.vector_store %arg5[%c0_12, %c0_13], %28 {strides = array<i32>} : memref<16x128xf32, #tpu.memory_space<vmem>>, vector<16x128xf32>,
    } else {
    }
    %c0 = arith.constant 0 : index
    %c0_1 = arith.constant 0 : index
    %c0_2 = arith.constant 0 : index
    %3 = vector.load %arg2[%c0, %c0_1, %c0_2] : memref<1x1x16xi32, #tpu.memory_space<vmem>>, vector<1x1x16xi32>
    %4 = vector.shape_cast %3 : vector<1x1x16xi32> to vector<1x16xi32>
    %c0_i32_3 = arith.constant 0 : i32
    %5 = vector.broadcast %c0_i32_3 : i32 to vector<1x16xi32>
    %6 = arith.cmpi ne, %4, %5 : vector<1x16xi32>
    %7 = arith.extui %6 : vector<1x16xi1> to vector<1x16xi32>
    %8 = arith.sitofp %7 : vector<1x16xi32> to vector<1x16xf32>
    %9 = tpu.transpose %8, [1, 0] : vector<1x16xf32> -> vector<16x1xf32>
    %c0_4 = arith.constant 0 : index
    %c0_5 = arith.constant 0 : index
    %10 = vector.load %arg5[%c0_4, %c0_5] : memref<16x128xf32, #tpu.memory_space<vmem>>, vector<16x128xf32>
    %11 = vector.broadcast %9 : vector<16x1xf32> to vector<16x128xf32>
    %12 = arith.mulf %10, %11 : vector<16x128xf32>
    %13 = vector.shape_cast %12 : vector<16x128xf32> to vector<1x16x128xf32>
    %c0_6 = arith.constant 0 : index
    %c0_7 = arith.constant 0 : index
    %c0_8 = arith.constant 0 : index
    %14 = vector.load %arg4[%c0_6, %c0_7, %c0_8] : memref<1x16x128xf32, #tpu.memory_space<vmem>>, vector<1x16x128xf32>
    tpu.vector_store %arg4[%c0_6, %c0_7, %c0_8], %13 {strides = array<i32>} : memref<1x16x128xf32, #tpu.memory_space<vmem>>, vector<1x16x128xf32>,
    return
  }
  func.func @transform_0(%arg0: i32, %arg1: i32) -> (i32, i32, i32) {
    %c0_i32 = arith.constant 0 : i32
    %c0_i32_0 = arith.constant 0 : i32
    return %arg1, %c0_i32, %arg0 : i32, i32, i32
  }
  func.func @transform_1(%arg0: i32, %arg1: i32) -> (i32, i32) {
    %c0_i32 = arith.constant 0 : i32
    %c0_i32_0 = arith.constant 0 : i32
    %c0_i32_1 = arith.constant 0 : i32
    return %c0_i32, %c0_i32_0 : i32, i32
  }
  func.func @transform_2(%arg0: i32, %arg1: i32) -> (i32, i32, i32) {
    %c0_i32 = arith.constant 0 : i32
    %c0_i32_0 = arith.constant 0 : i32
    return %arg1, %arg0, %c0_i32 : i32, i32, i32
  }
}

</mosaic_0001>

<bundles_post_ra>
// kernel: tpu_custom_call.1
= control target key start
LH: loop header
LB: loop body
LE: loop exit
PB: predicated region body
PF: predicated region fallthrough
CT: control target
= control target key end

     0   :  { %7 = vsyncpa [#allocation4], 0  ;;  %s1087_s0 = inlined_call_operand.hbm [shape: s32[2,1,16], index: 0, kind: input, shape index: {}]   ;;  %s1088_s1 = inlined_call_operand.vmem [shape: f32[2,128], index: 1, kind: input, shape index: {}]   ;;  %s1089_s2 = inlined_call_operand.hbm [shape: f32[2,16,128], index: 2, kind: output, shape index: {}]  }
   0x1   :  { %9 = vsyncpa [#allocation4 + $0x1], 0 }
   0x2   :  { %10 = vsyncpa [#allocation5], 0 }
   0x3   :  { %12 = vsyncpa [#allocation5 + $0x1], 0  ;;  %s822_s9 = smov 0   ;;  %s824_s10 = smov 0  }
   0x4   :  { %s826_s11 = smov 0   ;;  %s828_s12 = smov 0  }
   0x5   :  { %s830_s13 = smov 0   ;;  %s832_s14 = smov 0  }
   0x6 LB: > { %s562_s15 = sadd.s32 4294967295, %s793_s14   ;;  %s563_s16 = sadd.s32 4294967294, %s793_s14   ;;  %s793_s14 = sphi %s832_s14, %s18_s14   ;;  %s789_s13 = sphi %s830_s13, %s1107_s13   ;;  %s785_s12 = sphi %s828_s12, %s1106_s12   ;;  %s781_s11 = sphi %s826_s11, %s1105_s11   ;;  %s777_s10 = sphi %s824_s10, %s1104_s10   ;;  %s773_s9 = sphi %s822_s9, %s1103_s9  }
   0x7   : > { %s27_s17 = sadd.s32 1, %s789_s13  ;;  %s39_s18 = sadd.s32 1, %s781_s11 }
   0x8   : > { %p28_p0 = scmp.ge.s32.totalorder %s27_s17, 2  ;;  %p46_p1 = scmp.ne.s32.totalorder %s781_s11, %s777_s10 }
   0x9   : > { %p47_p2 = scmp.eq.s32.totalorder %s793_s14, 0  ;;  %p52_p3 = scmp.ne.s32.totalorder %s777_s10, %s773_s9 }
   0xa   : > { %s1109_s17 = smov (%p28_p0, %s27_s17), 0  ;;  %p53_p5 = scmp.eq.s32.totalorder %s562_s15, 0 }
   0xb   : > { %p863_p4 = por %p47_p2, %p46_p1  ;;  %s34_s20 = ssub.s32 %s789_s13, %s1109_s17 }
   0xc   : > { %p99_p6 = scmp.eq.s32.totalorder %s562_s15, 1  ;;  %p37_p7 = scmp.eq.s32.totalorder %s34_s20, 0 }
   0xd   : > { %p869_p8 = por %p53_p5, %p52_p3  ;;  %p105_p10 = scmp.eq.s32.totalorder %s563_s16, 1 }
   0xe   : > { %p873_p9 = por %p99_p6, %p46_p1  ;;  %p607_p13 = scmp.lt.s32.totalorder %s793_s14, 2 }
   0xf   : > { %s878_s23 = scalar_select %p37_p7, %s781_s11, %s39_s18  }
  0x10   : > { %s1093_s22 = scalar_select %p873_p9, 1, 0 }
  0x11   : > { %p880_p11 = por %p105_p10, %p52_p3  ;;  %s128_s25 = sand.u32 1, %s781_s11  }
  0x12   : > { %s566_s26 = sshll.u32 %s789_s13, 4  ;;  %s131_s27 = scalar_lea.vmem [#allocation3], %s128_s25 }
  0x13   : > { %s1094_s24 = scalar_select %p880_p11, 1, 0 }
  0x14   : > { %s139_s28 = sshll.u32 %s131_s27, 4  ;;  %s891_s3 = scalar_lea.hbm %s1087_s0, %s566_s26  ;;  %s893_s28 = int_to_ptr.vmem [resolvable:$true] %s139_s28 }
  0x15   : > { %p897_p0 = pnand %p607_p13, %p863_p4  ;;  %s129_s5 = scalar_lea.sflag [#allocation4], %s128_s25 }
  0x16   : > { %s681_s6 = scalar_lea.hbm %s891_s3, 16  ;;  %s686_s15 = scalar_lea.hbm %s1087_s0, 32 }
  0x17   : > { %p682_p3 = scmp.ne.s32.totalorder %s891_s3, %s681_s6  ;;  %p683_p5 = pneg %p897_p0 }
  0x18   : > { %p687_p4 = scmp.lt.u32.totalorder %s891_s3, %s1087_s0  ;;  %p688_p10 = scmp.lt.u32.totalorder %s686_s15, %s681_s6 }
  0x19   : > { %p684_p6 = pnand %p683_p5, %p682_p3  ;;  %p690_p12 = scmp.lt.u32.totalorder %s681_s6, %s891_s3 }
  0x1a   : > { %p689_p13 = por %p688_p10, %p687_p4 }
  0x1b   : > { %p685_p7 = pneg %p684_p6 }
  0x1c   : > { %p691_p1 = por %p690_p12, %p689_p13 }
  0x1e   : > { %p692_p2 = pnand %p691_p1, %p685_p7 }
  0x20   : > { %695 = shalt.err (!%p692_p2)
}
  0x21   : > { %s696_s19 = scalar_lea.vmem %s893_s28, 16  ;;  %s795_s20 = smov [#allocation3]  }
  0x22   : > { %p697_p3 = scmp.ne.s32.totalorder %s893_s28, %s696_s19  ;;  %s701_s25 = sshll.u32 %s795_s20, 4  ;;  %s702_s25 = int_to_ptr.vmem [resolvable:$false] %s701_s25 }
  0x23   : > { %s703_s26 = scalar_lea.vmem %s702_s25, 32  ;;  %p704_p9 = scmp.lt.s32.totalorder %s893_s28, %s702_s25 }
  0x24   : > { %p699_p6 = pnand %p697_p3, %p683_p5  ;;  %p705_p4 = scmp.lt.s32.totalorder %s703_s26, %s696_s19 }
  0x26   : > { %p700_p11 = pneg %p699_p6  ;;  %p706_p10 = por %p705_p4, %p704_p9 }
  0x28   : > { %p707_p12 = pnand %p706_p10, %p700_p11 }
  0x2a   : > { %710 = shalt.err (!%p707_p12)
}
  0x2b   : > { %602 = dma.hbm_to_vmem [thread:$0]  (!%p897_p0), %s891_s3, 16, %s893_s28, %s129_s5  }
  0x2c   : > { %p1096_p1 = scmp.lt.s32.totalorder %s793_s14, 3  ;;  %p1097_p2 = scmp.ge.s32.totalorder %s793_s14, 1 }
  0x2e   : > { %p145_p5 = pnand %p1097_p2, %p1096_p1 }
  0x2f   : > { %s933_s27 = sand.u32 (!%p145_p5), 1, %s777_s10  }
  0x30   : > { %148 = sbr.rel (%p145_p5) target bundleno = 445 (0x1bd), region = 28  ;;  %s151_s29 = scalar_lea.sflag (!%p145_p5), [#allocation4], %s933_s27 }
  0x31   : > { %s153_s30 = scalar_lea.vmem (!%p145_p5), [#allocation3], %s933_s27 }
  0x37   : > { %764 = dma.done.wait (%p869_p8), %s151_s29, 16  }
  0x38   : > { %766 = vsyncadd (%p869_p8), %s151_s29, 4294967280  ;;  %s568_s4 = sshll.u32 %s933_s27, 4  ;;  %p569_p9 = scmp.ne.s32.totalorder %s785_s12, 0 }
  0x39   : > { %s942_s28 = scalar_lea.vmem [#allocation6], %s568_s4  ;;  %v180_v0 = vlaneseq (!%p569_p9)  ;;  %v570_v4 = vld [vmem:[%s1088_s1] ss:$0 sm:$0xff] (!%p569_p9)  ;;  %v571_v7 = vld [vmem:[%s1088_s1 + $0x1] ss:$0 sm:$0xff] (!%p569_p9) }
  0x3a   : > { %177 = sbr.rel (%p569_p9) target bundleno = 160 (0xa0), region = 36  ;;  %v796_v32 = vmov (!%p569_p9), 683565275   ;;  %v797_v34 = vmov (!%p569_p9), 2475754826  }
  0x3b   : > { %v181_v1 = vshrl.u32 (!%p569_p9), %v180_v0, 7  ;;  %v798_v36 = vmov (!%p569_p9), 2131351028   ;;  %v799_v38 = vmov (!%p569_p9), 2102212464  }
  0x3c   : > { %v800_v40 = vmov (!%p569_p9), 920167782   ;;  %v801_v47 = vmov (!%p569_p9), 1326507024  }
  0x3d   : > { %v182_v2 = vadd.s32 (!%p569_p9), 8, %v181_v1  ;;  %v184_v3 = vadd.s32 (!%p569_p9), 1, %v181_v1 }
  0x3f   : > { %v185_v5 = vadd.s32 (!%p569_p9), 1, %v182_v2  ;;  %v186_v6 = vcvt.s32.f32 (!%p569_p9), %v184_v3 }
  0x41   : > { %v187_v8 = vcvt.s32.f32 %v185_v5  ;;  %v193_v9 = vmul.f32 %v570_v4, %v186_v6 }
  0x43   : > { %v194_v10 = vmul.f32 %v570_v4, %v187_v8  ;;  %v951_v11 = vadd.f32 %v571_v7, %v193_v9 }
  0x45   : > { %v953_v12 = vadd.f32 %v571_v7, %v194_v10  ;;  %v202_v13 = vand.u32 2147483647, %v951_v11  ;;  %v205_v14 = vand.u32 2139095040, %v951_v11  ;;  %vm204_vm14 = vcmp.lt.s32.totalorder %v951_v11, 0 }
  0x47   : > { %v206_v15 = vshrl.u32 %v205_v14, 23  ;;  %v209_v16 = vand.u32 8388607, %v202_v13  ;;  %v306_v17 = vand.u32 2147483647, %v953_v12  ;;  %v309_v18 = vand.u32 2139095040, %v953_v12 }
  0x48   : > { %vm203_vm15 = vcmp.le.f32.partialorder %v202_v13, 0.7853982 }
  0x49   : > { %v572_v19 = vadd.s32 4294967169, %v206_v15  ;;  %v310_v20 = vshrl.u32 %v309_v18, 23  ;;  %v210_v22 = vor.u32 8388608, %v209_v16  ;;  %v963_v24 = vand.u32 8388607, %v306_v17 }
  0x4b   : > { %v212_v21 = vadd.s32 1, %v572_v19  ;;  %v576_v23 = vadd.s32 4294967169, %v310_v20  ;;  %v965_v29 = vshll.u32 %v210_v22, 8  ;;  %v314_v30 = vor.u32 8388608, %v963_v24 }
  0x4d   : > { %vm213_vm0 = vcmp.gt.s32.totalorder %v212_v21, 0  ;;  %v316_v26 = vadd.s32 1, %v576_v23 }
  0x4e   : > { %v214_v25 = vsel %vm213_vm0, %v212_v21, 0  ;;  %vm308_vm0 = vcmp.lt.s32.totalorder %v953_v12, 0 }
  0x4f   : > { %v215_v27 = vshrl.u32 %v214_v25, 5  ;;  %v216_v28 = vand.u32 31, %v214_v25  ;;  %vm317_vm1 = vcmp.gt.s32.totalorder %v316_v26, 0 }
  0x50   : > { %v318_v52 = vsel %vm317_vm1, %v316_v26, 0  ;;  %vm1016_vm1 = vcmp.le.f32.partialorder %v306_v17, 0.7853982 }
  0x51   : > { %v217_v31 = vsub.s32 32, %v216_v28  ;;  %v219_v33 = vshll.u32 %v796_v32, %v216_v28  ;;  %v222_v35 = vshll.u32 %v797_v34, %v216_v28  ;;  %v225_v37 = vshll.u32 %v798_v36, %v216_v28 }
  0x52   : > { %v228_v39 = vshll.u32 %v799_v38, %v216_v28  ;;  %v231_v41 = vshll.u32 %v800_v40, %v216_v28  ;;  %vm234_vm2 = vcmp.lt.s32.totalorder %v215_v27, 1  ;;  %vm235_vm3 = vcmp.lt.s32.totalorder %v215_v27, 2 }
  0x53   : > { %v218_v42 = vshrl.u32 %v796_v32, %v217_v31  ;;  %v220_v43 = vshrl.u32 %v797_v34, %v217_v31  ;;  %v223_v44 = vshrl.u32 %v798_v36, %v217_v31  ;;  %v226_v45 = vshrl.u32 %v799_v38, %v217_v31 }
  0x54   : > { %v229_v46 = vshrl.u32 %v800_v40, %v217_v31  ;;  %v232_v48 = vshrl.u32 %v801_v47, %v217_v31  ;;  %vm236_vm4 = vcmp.lt.s32.totalorder %v215_v27, 3  ;;  %vm237_vm5 = vcmp.lt.s32.totalorder %v215_v27, 4 }
  0x55   : > { %v221_v49 = vor.u32 %v220_v43, %v219_v33  ;;  %v224_v50 = vor.u32 %v223_v44, %v222_v35  ;;  %v227_v51 = vor.u32 %v226_v45, %v225_v37  ;;  %v319_v55 = vshrl.u32 %v318_v52, 5 }
  0x56   : > { %v230_v53 = vor.u32 %v229_v46, %v228_v39  ;;  %v233_v54 = vor.u32 %v232_v48, %v231_v41  ;;  %v320_v56 = vand.u32 31, %v318_v52 }
  0x57   : > { %v238_v57 = vsel %vm234_vm2, %v218_v42, %v221_v49  ;;  %v239_v58 = vsel %vm237_vm5, %v227_v51, 2102212464  ;;  %v242_v59 = vsel %vm234_vm2, %v221_v49, %v224_v50  ;;  %v246_v60 = vsel %vm234_vm2, %v224_v50, %v227_v51 }
  0x58   : > { %v240_v61 = vsel %vm236_vm4, %v224_v50, %v239_v58  ;;  %v243_v62 = vsel %vm237_vm5, %v230_v53, 920167782  ;;  %v247_v63 = vsel %vm237_vm5, %v233_v54, 1326507024  ;;  %v321_v0 = vsub.s32 32, %v320_v56 }
  0x59   : > { %v241_v1 = vsel %vm235_vm3, %v238_v57, %v240_v61  ;;  %v244_v2 = vsel %vm236_vm4, %v227_v51, %v243_v62  ;;  %v248_v3 = vsel %vm236_vm4, %v230_v53, %v247_v63  ;;  %v323_v4 = vshll.u32 %v796_v32, %v320_v56 }
  0x5a   : > { %v245_v5 = vsel %vm235_vm3, %v242_v59, %v244_v2  ;;  %v249_v6 = vsel %vm235_vm3, %v246_v60, %v248_v3  ;;  %v257_v7 = vmul.u32 %v965_v29, %v241_v1  ;;  %v322_v8 = vshrl.u32 %v796_v32, %v321_v0 }
  0x5b   : > { %v980_v9 = vmul.u32.u64.low %v965_v29, %v249_v6  ;;  %v981_v10 = vmul.u32.u64.high %v965_v29, %v249_v6, %v980_v9  ;;  %v984_v14 = vmul.u32.u64.low %v965_v29, %v245_v5  ;;  %v985_v15 = vmul.u32.u64.high %v965_v29, %v245_v5, %v984_v14 }
  0x5c   : > { %v324_v16 = vshrl.u32 %v797_v34, %v321_v0  ;;  %v326_v18 = vshll.u32 %v797_v34, %v320_v56  ;;  %v327_v19 = vshrl.u32 %v798_v36, %v321_v0  ;;  %v329_v20 = vshll.u32 %v798_v36, %v320_v56 }
  0x5d   : > { %v330_v21 = vshrl.u32 %v799_v38, %v321_v0  ;;  %v332_v22 = vshll.u32 %v799_v38, %v320_v56  ;;  %v333_v23 = vshrl.u32 %v800_v40, %v321_v0  ;;  %v335_v25 = vshll.u32 %v800_v40, %v320_v56 }
  0x5e   : > { %v325_v26 = vor.u32 %v324_v16, %v323_v4  ;;  %v328_v27 = vor.u32 %v327_v19, %v326_v18  ;;  %v336_v28 = vshrl.u32 %v801_v47, %v321_v0  ;;  %vm338_vm6 = vcmp.lt.s32.totalorder %v319_v55, 1 }
  0x5f   : > { %vm259_vm7 = vc.u32 %v981_v10, %v984_v14  ;;  %v260_v31 = vadd.s32 1, %v985_v15  ;;  %v331_v32 = vor.u32 %v330_v21, %v329_v20  ;;  %v354_v29 = vshll.u32 %v314_v30, 8 }
  0x60   : > { %v334_v33 = vor.u32 %v333_v23, %v332_v22  ;;  %v337_v34 = vor.u32 %v336_v28, %v335_v25  ;;  %vm339_vm8 = vcmp.lt.s32.totalorder %v319_v55, 2  ;;  %vm340_vm9 = vcmp.lt.s32.totalorder %v319_v55, 3 }
  0x61   : > { %v261_v35 = vsel %vm259_vm7, %v260_v31, %v985_v15  ;;  %vm341_vm10 = vcmp.lt.s32.totalorder %v319_v55, 4  ;;  %v342_v36 = vsel %vm338_vm6, %v322_v8, %v325_v26  ;;  %v346_v37 = vsel %vm338_vm6, %v325_v26, %v328_v27 }
  0x62   : > { %v262_v38 = vadd.s32 %v261_v35, %v257_v7  ;;  %v343_v39 = vsel %vm341_vm10, %v331_v32, 2102212464  ;;  %v347_v40 = vsel %vm341_vm10, %v334_v33, 920167782  ;;  %v350_v41 = vsel %vm338_vm6, %v328_v27, %v331_v32 }
  0x63   : > { %v344_v42 = vsel %vm340_vm9, %v328_v27, %v343_v39  ;;  %v348_v43 = vsel %vm340_vm9, %v331_v32, %v347_v40  ;;  %v351_v24 = vsel %vm341_vm10, %v337_v34, 1326507024  ;;  %v258_v2 = vadd.s32 %v984_v14, %v981_v10 }
  0x64   : > { %v263_v30 = vadd.s32 536870912, %v262_v38  ;;  %v349_v44 = vsel %vm339_vm8, %v346_v37, %v348_v43  ;;  %v352_v45 = vsel %vm340_vm9, %v334_v33, %v351_v24  ;;  %v345_v46 = vsel %vm339_vm8, %v342_v36, %v344_v42 }
  0x65   : > { %v353_v47 = vsel %vm339_vm8, %v350_v41, %v352_v45  ;;  %v998_v48 = vmul.u32.u64.low %v354_v29, %v349_v44  ;;  %v999_v49 = vmul.u32.u64.high %v354_v29, %v349_v44, %v998_v48  ;;  %v361_v54 = vmul.u32 %v354_v29, %v345_v46 }
  0x66   : > { %v264_v50 = vshrl.u32 %v263_v30, 30  ;;  %v1001_v51 = vmul.u32.u64.low %v354_v29, %v353_v47  ;;  %v1002_v52 = vmul.u32.u64.high %v354_v29, %v353_v47, %v1001_v51  ;;  %vm294_vm5 = vweird.f32 %v951_v11 }
  0x67   : > { %v364_v56 = vadd.s32 1, %v999_v49  ;;  %vm398_vm9 = vweird.f32 %v953_v12 }
  0x68   : > { %v265_v53 = vshll.u32 %v264_v50, 30  ;;  %vm363_vm11 = vc.u32 %v1002_v52, %v998_v48  ;;  %v288_v26 = vsub.s32 4, %v264_v50  ;;  %v362_v10 = vadd.s32 %v998_v48, %v1002_v52 }
  0x69   : > { %v365_v58 = vsel %vm363_vm11, %v364_v56, %v999_v49 }
  0x6a   : > { %v266_v57 = vsub.s32 %v262_v38, %v265_v53  ;;  %v366_v60 = vadd.s32 %v365_v58, %v361_v54  ;;  %v289_v33 = vsel %vm204_vm14, %v288_v26, %v264_v50 }
  0x6b   : > { %v291_v38 = vsel %vm203_vm15, 0, %v289_v33 }
  0x6c   : > { %v268_v59 = vsub.s32 0, %v266_v57  ;;  %v367_v61 = vadd.s32 536870912, %v366_v60  ;;  %v295_v43 = vadd.s32 3, %v291_v38 }
  0x6e   : > { %v573_v55 = vmin.u32 %v268_v59, %v266_v57  ;;  %v368_v63 = vshrl.u32 %v367_v61, 30  ;;  %v296_v45 = vand.u32 3, %v295_v43 }
  0x70   : > { %v270_v62 = vclz %v573_v55  ;;  %v369_v1 = vshll.u32 %v368_v63, 30  ;;  %v392_v30 = vsub.s32 4, %v368_v63  ;;  %vm301_vm2 = vcmp.eq.s32.totalorder %v296_v45, 2 }
  0x71   : > { %vm298_vm3 = vcmp.eq.s32.totalorder %v296_v45, 0  ;;  %vm297_vm4 = vcmp.lt.s32.totalorder %v296_v45, 2 }
  0x72   : > { %v574_v0 = vadd.s32 4294967294, %v270_v62  ;;  %v370_v4 = vsub.s32 %v366_v60, %v369_v1  ;;  %v393_v47 = vsel %vm308_vm0, %v392_v30, %v368_v63 }
  0x73   : > { %v395_v51 = vsel %vm1016_vm1, 0, %v393_v47 }
  0x74   : > { %vm575_vm12 = vcmp.lt.s32.totalorder %v574_v0, 0  ;;  %v372_v8 = vsub.s32 0, %v370_v4  ;;  %v399_v56 = vadd.s32 3, %v395_v51 }
  0x75   : > { %v273_v3 = vsel %vm575_vm12, 0, %v574_v0 }
  0x76   : > { %v274_v5 = vsub.s32 32, %v273_v3  ;;  %v275_v6 = vshll.u32 %v266_v57, %v273_v3  ;;  %v278_v7 = vsub.s32 4294967266, %v273_v3  ;;  %v577_v16 = vmin.u32 %v372_v8, %v370_v4 }
  0x77   : > { %v400_v60 = vand.u32 3, %v399_v56 }
  0x78   : > { %v276_v9 = vshrl.u32 %v258_v2, %v274_v5  ;;  %v279_v15 = vadd.s32 127, %v278_v7  ;;  %v374_v20 = vclz %v577_v16 }
  0x79   : > { %vm405_vm6 = vcmp.eq.s32.totalorder %v400_v60, 2  ;;  %vm402_vm7 = vcmp.eq.s32.totalorder %v400_v60, 0  ;;  %vm401_vm8 = vcmp.lt.s32.totalorder %v400_v60, 2 }
  0x7a   : > { %v277_v18 = vor.u32 %v276_v9, %v275_v6  ;;  %v280_v19 = vshll.u32 %v279_v15, 23  ;;  %v578_v23 = vadd.s32 4294967294, %v374_v20 }
  0x7c   : > { %v281_v21 = vor.u32 4788187, %v280_v19  ;;  %v284_v22 = vcvt.s32.f32 %v277_v18  ;;  %vm579_vm13 = vcmp.lt.s32.totalorder %v578_v23, 0 }
  0x7d   : > { %v377_v27 = vsel %vm579_vm13, 0, %v578_v23 }
  0x7e   : > { %v282_v25 = vand.u32 2147483647, %v281_v21  ;;  %v378_v28 = vsub.s32 32, %v377_v27  ;;  %v379_v31 = vshll.u32 %v370_v4, %v377_v27  ;;  %v382_v32 = vsub.s32 4294967266, %v377_v27 }
  0x80   : > { %v285_v14 = vmul.f32 %v284_v22, %v282_v25  ;;  %v380_v34 = vshrl.u32 %v362_v10, %v378_v28  ;;  %v383_v35 = vadd.s32 127, %v382_v32 }
  0x82   : > { %v286_v29 = vxor.u32 2147483648, %v285_v14  ;;  %v381_v39 = vor.u32 %v380_v34, %v379_v31  ;;  %v384_v40 = vshll.u32 %v383_v35, 23 }
  0x84   : > { %v287_v36 = vsel %vm204_vm14, %v286_v29, %v285_v14  ;;  %v385_v41 = vor.u32 4788187, %v384_v40  ;;  %v388_v42 = vcvt.s32.f32 %v381_v39 }
  0x85   : > { %v290_v37 = vsel %vm203_vm15, %v951_v11, %v287_v36 }
  0x86   : > { %667 = vcosq.f32 %v290_v37  ;;  %v386_v24 = vand.u32 2147483647, %v385_v41 }
  0x87   : > { %669 = vsinq.f32 %v290_v37 }
  0x88   : > { %v389_v44 = vmul.f32 %v388_v42, %v386_v24 }
  0x8a   : > { %v390_v46 = vxor.u32 2147483648, %v389_v44 }
  0x8c   : > { %v391_v48 = vsel %vm308_vm0, %v390_v46, %v389_v44 }
  0x8d   : > { %v394_v50 = vsel %vm1016_vm1, %v953_v12, %v391_v48 }
  0x8e   : > { %671 = vcosq.f32 %v394_v50 }
  0x8f   : > { %673 = vsinq.f32 %v394_v50 }
  0x90   : > { %v668_v49 = vpop.eup %667 }
  0x91   : > { %v670_v52 = vpop.eup %669  ;;  %v302_v53 = vxor.u32 2147483648, %v668_v49 }
  0x92   : > { %v299_v17 = vxor.u32 2147483648, %v670_v52 }
  0x93   : > { %v303_v54 = vsel %vm301_vm2, %v302_v53, %v670_v52 }
  0x94   : > { %v300_v57 = vsel %vm298_vm3, %v668_v49, %v299_v17 }
  0x95   : > { %v304_v58 = vsel %vm297_vm4, %v300_v57, %v303_v54 }
  0x96   : > { %v305_v59 = vsel %vm294_vm5, nan, %v304_v58 }
  0x97   : > { %410 = vst [vmem:[#allocation2] sm:$0xff] %v305_v59 }
  0x98   : > { %v672_v55 = vpop.eup %671 }
  0x99   : > { %v674_v61 = vpop.eup %673  ;;  %v406_v62 = vxor.u32 2147483648, %v672_v55 }
  0x9a   : > { %v403_v63 = vxor.u32 2147483648, %v674_v61 }
  0x9b   : > { %v407_v0 = vsel %vm405_vm6, %v406_v62, %v674_v61 }
  0x9c   : > { %v404_v1 = vsel %vm402_vm7, %v672_v55, %v403_v63 }
  0x9d   : > { %v408_v2 = vsel %vm401_vm8, %v404_v1, %v407_v0 }
  0x9e   : > { %v409_v11 = vsel %vm398_vm9, nan, %v408_v2 }
  0x9f   : > { %411 = vst [vmem:[#allocation2 + $0x8] sm:$0xff] %v409_v11 }
  0xa0 PF: > { %v412_v3 = vld [vmem:[%s153_s30] sm:$0x1]  ;;  %v802_v4 = vmov 0.0   ;;  %v803_v6 = vmov 0   ;;  %s586_s7 = sshll.u32 %s785_s12, 8  ;;  %s480_s8 = sshll.u32 %s942_s28, 4  ;;  %s1036_s8 = int_to_ptr.vmem [resolvable:$true] %s480_s8 }
  0xa1   : > { %vm413_vm10 = vcmp.ne.s32.totalorder %v412_v3, 0  ;;  %v448_v9 = vld [vmem:[#allocation2] sm:$0xff]  ;;  %s1034_s18 = scalar_lea.hbm %s1089_s2, %s586_s7  ;;  %s465_s12 = scalar_lea.sflag [#allocation5], %s933_s27 }
  0xa2   : > { %v580_v5 = vsel %vm413_vm10, 1.0, %v802_v4  ;;  %s711_s19 = scalar_lea.vmem %s1036_s8, 256  ;;  %p1100_p11 = scmp.ne.s32.totalorder %s1093_s22, 0 }
  0xa3   : > { %416 = vxpose.xlu0.b32.start.end [1/1] (short) (narrow) %v580_v5, 16  ;;  %p712_p8 = scmp.ne.s32.totalorder %s1036_s8, %s711_s19  ;;  %s804_s20 = smov [#allocation6]  }
  0xa4   : > { %s715_s25 = sshll.u32 %s804_s20, 4  ;;  %s716_s25 = int_to_ptr.vmem [resolvable:$false] %s715_s25 }
  0xa5   : > { %p713_p0 = pnand %p712_p8, %p1100_p11  ;;  %s717_s26 = scalar_lea.vmem %s716_s25, 512 }
  0xa6   : > { %v449_v15 = vld [vmem:[#allocation2 + $0x8] sm:$0xff]  ;;  %p718_p13 = scmp.lt.s32.totalorder %s1036_s8, %s716_s25  ;;  %p719_p3 = scmp.lt.s32.totalorder %s717_s26, %s711_s19 }
  0xa7   : > { %p714_p7 = pneg %p713_p0 }
  0xa8   : > { %p720_p6 = por %p719_p3, %p718_p13 }
  0xaa   : > { %p721_p4 = pnand %p720_p6, %p714_p7 }
  0xcc   : > { %675 = vset.pattern.permute.xlu0 %v803_v6 }
 0x123   : > { %v432_v7 = vpop.trf.xlu0 }
 0x127   : > { %v433_v12 = vpop.trf.xlu0 }
 0x128   : > { %v676_v8 = vpack.i.bf16 %v433_v12, %v432_v7 }
 0x12a   : > { %677 = vperm.xlu0 %675, %v676_v8  }
 0x1a9   : > { %v678_v16 = vpop.permute.xlu0 %677 }
 0x1aa   : > { %v680_v18 = vunpack.i.h.bf16 %v678_v16  ;;  %v679_v19 = vunpack.i.l.bf16 %v678_v16 }
 0x1ac   : > { %v461_v20 = vmul.f32 %v680_v18, %v449_v15  ;;  %v460_v21 = vmul.f32 %v679_v19, %v448_v9 }
 0x1ae   : > { %463 = vst [vmem:[%s942_s28 + $0x8] sm:$0xff] %v461_v20  ;;  %462 = vst [vmem:[%s942_s28] sm:$0xff] %v460_v21 }
 0x1af   : > { %724 = shalt.err (!%p721_p4)
}
 0x1b0   : > { %s725_s29 = scalar_lea.hbm %s1034_s18, 256  ;;  %s729_s28 = scalar_lea.hbm %s1089_s2, 512 }
 0x1b1   : > { %p726_p10 = scmp.ne.s32.totalorder %s1034_s18, %s725_s29  ;;  %p730_p2 = scmp.lt.u32.totalorder %s1034_s18, %s1089_s2 }
 0x1b2   : > { %p731_p5 = scmp.lt.u32.totalorder %s729_s28, %s725_s29  ;;  %p733_p8 = scmp.lt.u32.totalorder %s725_s29, %s1034_s18 }
 0x1b3   : > { %p727_p12 = pnand %p726_p10, %p1100_p11 }
 0x1b4   : > { %p732_p9 = por %p731_p5, %p730_p2 }
 0x1b5   : > { %p728_p1 = pneg %p727_p12 }
 0x1b6   : > { %p734_p0 = por %p733_p8, %p732_p9 }
 0x1b8   : > { %p735_p7 = pnand %p734_p0, %p728_p1 }
 0x1ba   : > { %738 = shalt.err (!%p735_p7)
}
 0x1bb   : > { %s805_s6 = smov 128   ;;  %s806_s21 = smov 8  }
 0x1bc   : > { %597 = dma.vmem_to_hbm [thread:$0]  (%p1100_p11), %s1036_s8, 256, %s1034_s18, %s465_s12, %s805_s6, %s805_s6, %s806_s21  }
 0x1bd PF: > { %s495_s7 = sand.u32 1, %s773_s9   ;;  %p1101_p13 = scmp.ne.s32.totalorder %s1094_s24, 0 }
 0x1be   : > { %p1102_p3 = scmp.ge.s32.totalorder %s793_s14, 2  ;;  %s496_s15 = scalar_lea.sflag [#allocation5], %s495_s7 }
 0x1c0   : > { %p604_p6 = pnand %p1102_p3, %p1101_p13 }
 0x1c2   : > { %768 = dma.done.wait (!%p604_p6), %s496_s15, 256  }
 0x1c3   : > { %770 = vsyncadd (!%p604_p6), %s496_s15, 4294967040  ;;  %s18_s14 = sadd.s32 1, %s793_s14   ;;  %s1103_s9 = smov %s777_s10 }
 0x1c4   : > { %p15_p4 = scmp.ge.s32.totalorder %s18_s14, 4   ;;  %s1104_s10 = smov %s781_s11 }
 0x1c5   : > { %s1105_s11 = smov %s878_s23  ;;  %s1106_s12 = smov %s789_s13 }
 0x1c6   : > { %s1107_s13 = smov %s1109_s17  ;;  %17 = sbr.rel (!%p15_p4) target bundleno = 6 (0x6), region = 77 }
 0x1cd   :  { %501 = vsyncpa [#allocation4], 1 }
 0x1ce   :  { %503 = vsyncpa [#allocation4 + $0x1], 1 }
 0x1cf   :  { %504 = vsyncpa [#allocation5], 1 }
 0x1d0   :  { %506 = vsyncpa [#allocation5 + $0x1], 1 }

</bundles_post_ra>
